<compile_context>
chip_gen: v5e
topology: v5e:2x2
jax: 0.10.0
libtpu: 0.0.40
codegen_flags: <defaults>
</compile_context>

<pallas_src>
import math

import jax
import jax.numpy as jnp
from jax.experimental import pallas as pl
from jax.experimental.pallas import tpu as pltpu


def _ffn_label_kernel(x_ref, w1_ref, b1_ref, w2_ref, sel_ref, b2_ref, out_ref):
    # x_ref:   (B, D)        compute dtype (f32 or bf16)       -- resident
    # w1_ref:  (D, TL*H)     compute dtype, this step's fused W1 tile
    # b1_ref:  (1, TL*H)     f32
    # w2_ref:  (1, TL*H)     f32
    # sel_ref: (TL*H, TL)    f32 0/1 block-diagonal H-reduction selector -- resident
    # b2_ref:  (1, 1, TL)    f32
    # out_ref: (1, B, TL)
    # Layer 1: one fused MXU matmul covering TL labels, f32 accumulation.
    h = jnp.dot(x_ref[...], w1_ref[...],
                preferred_element_type=jnp.float32)        # (B, TL*H)
    h = jnp.maximum(h + b1_ref[...], 0.0)                  # bias + ReLU (VPU, f32)
    # Layer 2: elementwise multiply by w2 (VPU), then segmented sum over each
    # label's H hidden units via one matmul against the resident 0/1 selector.
    hw = h * w2_ref[...]                                   # (B, TL*H)
    y = jnp.dot(hw, sel_ref[...],
                preferred_element_type=jnp.float32)        # (B, TL)
    out_ref[0] = (y + b2_ref[0]).astype(out_ref.dtype)


def _choose_label_tile(L, D, H, compute_bytes, max_w1_tile_bytes):
    """Pick TL (labels per grid step) and the padded label count."""
    per_label_bytes = D * H * compute_bytes
    if per_label_bytes * L <= max_w1_tile_bytes:
        return L, L                       # whole problem in one grid step
    # Multi-step: the fused W1 tile's last dim (TL*H) must be a multiple of 128.
    tl_unit = 128 // math.gcd(H, 128)
    tl = max(1, max_w1_tile_bytes // per_label_bytes)
    tl = max(tl_unit, (tl // tl_unit) * tl_unit)
    l_pad = ((L + tl - 1) // tl) * tl
    return tl, l_pad


def ffn_label_wise(x, w1, b1, w2, b2, *, compute_dtype=None,
                   max_w1_tile_bytes=8 * 2**20):
    """x: (B, D); w1: (L, D, H); b1: (L, H); w2: (L, H); b2: (L,) -> (B, L)."""
    B, D = x.shape
    L, D2, H = w1.shape
    assert D2 == D
    out_dtype = x.dtype
    cdt = jnp.dtype(compute_dtype) if compute_dtype is not None else x.dtype

    tl, l_pad = _choose_label_tile(L, D, H, jnp.dtype(cdt).itemsize,
                                   max_w1_tile_bytes)
    g = l_pad // tl
    tn = tl * H

    pad = l_pad - L
    if pad:  # zero-padded labels produce exactly 0 and are sliced off below
        w1 = jnp.pad(w1, ((0, pad), (0, 0), (0, 0)))
        b1 = jnp.pad(b1, ((0, pad), (0, 0)))
        w2 = jnp.pad(w2, ((0, pad), (0, 0)))
        b2 = jnp.pad(b2, ((0, pad),))

    # Fused label*hidden layout (label-major, hidden-minor on the lane axis).
    w1f = jnp.transpose(w1, (1, 0, 2)).reshape(D, l_pad * H).astype(cdt)
    b1f = b1.reshape(1, l_pad * H).astype(jnp.float32)
    w2f = w2.reshape(1, l_pad * H).astype(jnp.float32)
    b2r = b2.reshape(g, 1, tl).astype(jnp.float32)
    xc = x.astype(cdt)

    # 0/1 selector summing each label's H hidden units: sel[t*H + j, t] = 1.
    sel = (jnp.arange(tn, dtype=jnp.int32)[:, None] // H
           == jnp.arange(tl, dtype=jnp.int32)[None, :]).astype(jnp.float32)

    out = pl.pallas_call(
        _ffn_label_kernel,
        out_shape=jax.ShapeDtypeStruct((g, B, tl), out_dtype),
        grid_spec=pltpu.PrefetchScalarGridSpec(
            num_scalar_prefetch=0,
            grid=(g,),
            in_specs=[
                pl.BlockSpec((B, D), lambda i: (0, 0)),         # x   (resident)
                pl.BlockSpec((D, tn), lambda i: (0, i)),        # W1  fused tile
                pl.BlockSpec((1, tn), lambda i: (0, i)),        # b1  tile
                pl.BlockSpec((1, tn), lambda i: (0, i)),        # w2  tile
                pl.BlockSpec((tn, tl), lambda i: (0, 0)),       # selector (resident)
                pl.BlockSpec((1, 1, tl), lambda i: (i, 0, 0)),  # b2  tile
            ],
            out_specs=pl.BlockSpec((1, B, tl), lambda i: (i, 0, 0)),
        ),
        compiler_params=pltpu.CompilerParams(
            dimension_semantics=("parallel",),
            # Safe on v5e/v6e/v7x; raise toward 64-96 MiB on v6e for bigger tiles.
            vmem_limit_bytes=int(32 * 2**20),
        ),
    )(xc, w1f, b1f, w2f, sel, b2r)

    y = jnp.transpose(out, (1, 0, 2)).reshape(B, l_pad)   # tiny vs. W1 traffic
    return y[:, :L] if pad else y


def _init_params(key, input_dim, num_labels, hidden_dim, dtype=jnp.float32):
    # Deterministic init mimicking nn.Linear default (uniform +/- 1/sqrt(fan_in)).
    k1, k2, k3, k4 = jax.random.split(key, 4)
    lim1 = 1.0 / (input_dim ** 0.5)
    lim2 = 1.0 / (hidden_dim ** 0.5)
    w1 = jax.random.uniform(k1, (num_labels, input_dim, hidden_dim),
                            minval=-lim1, maxval=lim1, dtype=dtype)
    b1 = jax.random.uniform(k2, (num_labels, hidden_dim),
                            minval=-lim1, maxval=lim1, dtype=dtype)
    w2 = jax.random.uniform(k3, (num_labels, hidden_dim),
                            minval=-lim2, maxval=lim2, dtype=dtype)
    b2 = jax.random.uniform(k4, (num_labels,),
                            minval=-lim2, maxval=lim2, dtype=dtype)
    return w1, b1, w2, b2


def _reference(x, w1, b1, w2, b2):
    # Pure-JAX reference of the PyTorch forward pass -> (B, L).
    h = jnp.maximum(jnp.einsum("bd,ldh->blh", x, w1) + b1[None, :, :], 0.0)
    return jnp.einsum("blh,lh->bl", h, w2) + b2[None, :]


if __name__ == "__main__":
    # batch, input_dim, num_labels, hidden_dim (module default hidden_dim=128)
    B, D, L, H = 8, 32, 6, 128

    key = jax.random.PRNGKey(0)
    kx, kp = jax.random.split(key)
    x = jax.random.normal(kx, (B, D), dtype=jnp.float32)
    w1, b1, w2, b2 = _init_params(kp, D, L, H)

    ref = _reference(x, w1, b1, w2, b2)

    # 1) f32 path, single fused grid step (whole problem in one W1 tile).
    out = jax.block_until_ready(ffn_label_wise(x, w1, b1, w2, b2))
    assert out.shape == (B, L), out.shape
    assert jnp.allclose(out, ref, atol=1e-4, rtol=1e-4), "f32 mismatch vs reference"

    # 2) bf16 weight/activation streaming (halves W1 HBM bytes; f32 accumulation).
    out_bf16 = jax.block_until_ready(
        ffn_label_wise(x, w1, b1, w2, b2, compute_dtype=jnp.bfloat16))
    assert out_bf16.shape == (B, L), out_bf16.shape
    assert jnp.allclose(out_bf16.astype(jnp.float32), ref, atol=5e-2, rtol=5e-2), \
        "bf16 mismatch vs reference"

    # 3) Force the multi-step path (tl=4 labels/step, g=2, padded labels) to
    #    exercise tiling + zero-padding correctness.
    small_budget = 4 * D * H * 4  # bytes for 4 labels of f32 W1
    out_multi = jax.block_until_ready(
        ffn_label_wise(x, w1, b1, w2, b2, max_w1_tile_bytes=small_budget))
    assert out_multi.shape == (B, L), out_multi.shape
    assert jnp.allclose(out_multi, ref, atol=1e-4, rtol=1e-4), \
        "multi-step mismatch vs reference"

    print("KERNEL_OK")
</pallas_src>

<mosaic_0001>
module attributes {stable_mosaic.version = 11 : i64} {
  func.func @_ffn_label_kernel(%arg0: i32, %arg1: memref<8x32xf32, #tpu.memory_space<vmem>>, %arg2: memref<32x768xf32, #tpu.memory_space<vmem>>, %arg3: memref<1x768xf32, #tpu.memory_space<vmem>>, %arg4: memref<1x768xf32, #tpu.memory_space<vmem>>, %arg5: memref<768x6xf32, #tpu.memory_space<vmem>>, %arg6: memref<1x1x6xf32, #tpu.memory_space<vmem>>, %arg7: memref<1x8x6xf32, #tpu.memory_space<vmem>>) attributes {dimension_semantics = [#tpu.dimension_semantics<parallel>], iteration_bounds = array<i64: 1>, scalar_prefetch = 0 : i64, scratch_operands = 0 : i64, tpu.core_type = #tpu.core_type<tc>, window_params = [{pipeline_mode = #tpu.pipeline_mode<synchronous>, transform_indices = @transform_0, window_bounds = array<i64: 8, 32>}, {transform_indices = @transform_1, window_bounds = array<i64: 32, 768>}, {transform_indices = @transform_2, window_bounds = array<i64: 1, 768>}, {transform_indices = @transform_3, window_bounds = array<i64: 1, 768>}, {pipeline_mode = #tpu.pipeline_mode<synchronous>, transform_indices = @transform_4, window_bounds = array<i64: 768, 6>}, {transform_indices = @transform_5, window_bounds = array<i64: 1, 1, 6>}, {transform_indices = @transform_6, window_bounds = array<i64: 1, 8, 6>}]} {
    %c0 = arith.constant 0 : index
    %c0_0 = arith.constant 0 : index
    %0 = vector.load %arg1[%c0, %c0_0] : memref<8x32xf32, #tpu.memory_space<vmem>>, vector<8x32xf32>
    %c0_1 = arith.constant 0 : index
    %c0_2 = arith.constant 0 : index
    %1 = vector.load %arg2[%c0_1, %c0_2] : memref<32x768xf32, #tpu.memory_space<vmem>>, vector<32x768xf32>
    %cst = arith.constant dense<0.000000e+00> : vector<8x768xf32>
    %2 = tpu.matmul %0, %1, %cst {dimension_numbers = #tpu.dot_dimension_numbers<[1], [0], [0], [1], [0, 0, 1, 1], [], []>} : vector<8x32xf32>, vector<32x768xf32>, vector<8x768xf32> -> vector<8x768xf32>
    %c0_3 = arith.constant 0 : index
    %c0_4 = arith.constant 0 : index
    %3 = vector.load %arg3[%c0_3, %c0_4] : memref<1x768xf32, #tpu.memory_space<vmem>>, vector<1x768xf32>
    %4 = vector.broadcast %3 : vector<1x768xf32> to vector<8x768xf32>
    %5 = arith.addf %2, %4 : vector<8x768xf32>
    %cst_5 = arith.constant 0.000000e+00 : f32
    %6 = vector.broadcast %cst_5 : f32 to vector<8x768xf32>
    %7 = arith.maximumf %5, %6 : vector<8x768xf32>
    %c0_6 = arith.constant 0 : index
    %c0_7 = arith.constant 0 : index
    %8 = vector.load %arg4[%c0_6, %c0_7] : memref<1x768xf32, #tpu.memory_space<vmem>>, vector<1x768xf32>
    %9 = vector.broadcast %8 : vector<1x768xf32> to vector<8x768xf32>
    %10 = arith.mulf %7, %9 : vector<8x768xf32>
    %c0_8 = arith.constant 0 : index
    %c0_9 = arith.constant 0 : index
    %11 = vector.load %arg5[%c0_8, %c0_9] : memref<768x6xf32, #tpu.memory_space<vmem>>, vector<768x6xf32>
    %cst_10 = arith.constant dense<0.000000e+00> : vector<8x6xf32>
    %12 = tpu.matmul %10, %11, %cst_10 {dimension_numbers = #tpu.dot_dimension_numbers<[1], [0], [0], [1], [0, 0, 1, 1], [], []>} : vector<8x768xf32>, vector<768x6xf32>, vector<8x6xf32> -> vector<8x6xf32>
    %c0_11 = arith.constant 0 : index
    %c0_12 = arith.constant 0 : index
    %c0_13 = arith.constant 0 : index
    %13 = vector.load %arg6[%c0_11, %c0_12, %c0_13] : memref<1x1x6xf32, #tpu.memory_space<vmem>>, vector<1x1x6xf32>
    %14 = vector.shape_cast %13 : vector<1x1x6xf32> to vector<1x6xf32>
    %15 = vector.broadcast %14 : vector<1x6xf32> to vector<8x6xf32>
    %16 = arith.addf %12, %15 : vector<8x6xf32>
    %c0_14 = arith.constant 0 : index
    %c0_15 = arith.constant 0 : index
    %c0_16 = arith.constant 0 : index
    %17 = vector.load %arg7[%c0_14, %c0_15, %c0_16] : memref<1x8x6xf32, #tpu.memory_space<vmem>>, vector<1x8x6xf32>
    %18 = vector.shape_cast %17 : vector<1x8x6xf32> to vector<8x6xf32>
    %19 = vector.shape_cast %16 : vector<8x6xf32> to vector<1x8x6xf32>
    tpu.vector_store %arg7[%c0_14, %c0_15, %c0_16], %19 {strides = array<i32>} : memref<1x8x6xf32, #tpu.memory_space<vmem>>, vector<1x8x6xf32>,
    return
  }
  func.func @transform_0(%arg0: i32) -> (i32, i32) {
    %c0_i32 = arith.constant 0 : i32
    %c0_i32_0 = arith.constant 0 : i32
    %c0_i32_1 = arith.constant 0 : i32
    return %c0_i32, %c0_i32_0 : i32, i32
  }
  func.func @transform_1(%arg0: i32) -> (i32, i32) {
    %c0_i32 = arith.constant 0 : i32
    %c0_i32_0 = arith.constant 0 : i32
    return %c0_i32, %arg0 : i32, i32
  }
  func.func @transform_2(%arg0: i32) -> (i32, i32) {
    %c0_i32 = arith.constant 0 : i32
    %c0_i32_0 = arith.constant 0 : i32
    return %c0_i32, %arg0 : i32, i32
  }
  func.func @transform_3(%arg0: i32) -> (i32, i32) {
    %c0_i32 = arith.constant 0 : i32
    %c0_i32_0 = arith.constant 0 : i32
    return %c0_i32, %arg0 : i32, i32
  }
  func.func @transform_4(%arg0: i32) -> (i32, i32) {
    %c0_i32 = arith.constant 0 : i32
    %c0_i32_0 = arith.constant 0 : i32
    %c0_i32_1 = arith.constant 0 : i32
    return %c0_i32, %c0_i32_0 : i32, i32
  }
  func.func @transform_5(%arg0: i32) -> (i32, i32, i32) {
    %c0_i32 = arith.constant 0 : i32
    %c0_i32_0 = arith.constant 0 : i32
    %c0_i32_1 = arith.constant 0 : i32
    return %arg0, %c0_i32, %c0_i32_0 : i32, i32, i32
  }
  func.func @transform_6(%arg0: i32) -> (i32, i32, i32) {
    %c0_i32 = arith.constant 0 : i32
    %c0_i32_0 = arith.constant 0 : i32
    %c0_i32_1 = arith.constant 0 : i32
    return %arg0, %c0_i32, %c0_i32_0 : i32, i32, i32
  }
}

</mosaic_0001>

<bundles_post_ra>
// kernel: tpu_custom_call.1
= control target key start
LH: loop header
LB: loop body
LE: loop exit
PB: predicated region body
PF: predicated region fallthrough
CT: control target
= control target key end

     0   :  { %vm62_vm0 = vcmask 261120   ;;  %vm432_vm1 = vcmask 48128   ;;  %s869_s1 = inlined_call_operand.vmem [shape: f32[32,768], index: 1, kind: input, shape index: {}]   ;;  %s870_s0 = inlined_call_operand.vmem [shape: f32[8,32], index: 0, kind: input, shape index: {}]   ;;  %s871_s4 = inlined_call_operand.vmem [shape: f32[768,6], index: 4, kind: input, shape index: {}]   ;;  %s872_s5 = inlined_call_operand.vmem [shape: f32[1,1,6], index: 5, kind: input, shape index: {}]   ;;  %s873_s2 = inlined_call_operand.vmem [shape: f32[1,768], index: 2, kind: input, shape index: {}]   ;;  %s874_s3 = inlined_call_operand.vmem [shape: f32[1,768], index: 3, kind: input, shape index: {}]   ;;  %s875_s6 = inlined_call_operand.vmem [shape: f32[1,8,6], index: 6, kind: output, shape index: {}]  }
   0x1   :  { %v42_v0 = vld [vmem:[%s869_s1 + $0x90] sm:$0xff]  ;;  %v36_v1 = vld [vmem:[%s869_s1 + $0x60] sm:$0xff]  ;;  %v43_v2 = vld [vmem:[%s869_s1 + $0x98] sm:$0xff] }
   0x2   :  { %78 = vmatpush.msra.mxu0 %v42_v0  ;;  %98 = vmatpush.msra.mxu1 %v43_v2  ;;  %v37_v3 = vld [vmem:[%s869_s1 + $0x68] sm:$0xff]  ;;  %v30_v4 = vld [vmem:[%s869_s1 + $0x30] sm:$0xff]  ;;  %v31_v5 = vld [vmem:[%s869_s1 + $0x38] sm:$0xff] }
   0x3   :  { %v24_v6 = vld [vmem:[%s869_s1] sm:$0xff]  ;;  %v25_v7 = vld [vmem:[%s869_s1 + $0x8] sm:$0xff]  ;;  %v38_v11 = vld [vmem:[%s869_s1 + $0x70] sm:$0xff] }
   0x4   :  { %79 = vmatpush.msra.mxu0 %v36_v1  ;;  %99 = vmatpush.msra.mxu1 %v37_v3  ;;  %v507_v8 = vld [vmem:[%s870_s0] sm:$0xff]  ;;  %v45_v10 = vld [vmem:[%s869_s1 + $0xa8] sm:$0xff]  ;;  %v39_v12 = vld [vmem:[%s869_s1 + $0x78] sm:$0xff] }
   0x5   :  { %v44_v9 = vld [vmem:[%s869_s1 + $0xa0] sm:$0xff]  ;;  %v227_v13 = vld [vmem:[%s871_s4 + $0x78] sm:$0xff]  ;;  %v226_v14 = vld [vmem:[%s871_s4 + $0x70] sm:$0xff] }
   0x6   :  { %80 = vmatpush.msra.mxu0 %v30_v4  ;;  %100 = vmatpush.msra.mxu1 %v31_v5  ;;  %v243_v15 = vld [vmem:[%s871_s4 + $0xf8] sm:$0xff]  ;;  %v242_v16 = vld [vmem:[%s871_s4 + $0xf0] sm:$0xff]  ;;  %v32_v17 = vld [vmem:[%s869_s1 + $0x40] sm:$0xff] }
   0x7   :  { %v33_v18 = vld [vmem:[%s869_s1 + $0x48] sm:$0xff]  ;;  %312 = vmatpush.msra.mxu2 %v227_v13  ;;  %332 = vmatpush.msra.mxu3 %v243_v15  ;;  %v26_v21 = vld [vmem:[%s869_s1 + $0x10] sm:$0xff]  ;;  %v27_v22 = vld [vmem:[%s869_s1 + $0x18] sm:$0xff] }
   0x8   :  { %81 = vmatpush.msra.mxu0 %v24_v6  ;;  %101 = vmatpush.msra.mxu1 %v25_v7  ;;  %v225_v19 = vld [vmem:[%s871_s4 + $0x68] sm:$0xff]  ;;  %v46_v23 = vld [vmem:[%s869_s1 + $0xb0] sm:$0xff]  ;;  %v47_v24 = vld [vmem:[%s869_s1 + $0xb8] sm:$0xff] }
   0x9   :  { %438 = vmatmul.msk.f32.vlgmr.msra.gmra.mxu0 %vm62_vm0, %v507_v8  ;;  %439 = vmatmul.msk.f32.vlgmr.msra.gmra.mxu1 %vm62_vm0, %v507_v8  ;;  %v241_v20 = vld [vmem:[%s871_s4 + $0xe8] sm:$0xff]  ;;  %v224_v25 = vld [vmem:[%s871_s4 + $0x60] sm:$0xff]  ;;  %v223_v29 = vld [vmem:[%s871_s4 + $0x58] sm:$0xff] }
   0xa   :  { %118 = vmatpush.msrb.mxu0 %v44_v9  ;;  %138 = vmatpush.msrb.mxu1 %v45_v10  ;;  %v240_v26 = vld [vmem:[%s871_s4 + $0xe0] sm:$0xff]  ;;  %v41_v28 = vld [vmem:[%s869_s1 + $0x88] sm:$0xff]  ;;  %v239_v30 = vld [vmem:[%s871_s4 + $0xd8] sm:$0xff] }
   0xb   :  { %313 = vmatpush.msra.mxu2 %v226_v14  ;;  %333 = vmatpush.msra.mxu3 %v242_v16  ;;  %v40_v27 = vld [vmem:[%s869_s1 + $0x80] sm:$0xff]  ;;  %v34_v31 = vld [vmem:[%s869_s1 + $0x50] sm:$0xff]  ;;  %v35_v32 = vld [vmem:[%s869_s1 + $0x58] sm:$0xff] }
   0xc   :  { %119 = vmatpush.msrb.mxu0 %v38_v11  ;;  %139 = vmatpush.msrb.mxu1 %v39_v12  ;;  %v222_v33 = vld [vmem:[%s871_s4 + $0x50] sm:$0xff]  ;;  %v28_v35 = vld [vmem:[%s869_s1 + $0x20] sm:$0xff]  ;;  %v29_v36 = vld [vmem:[%s869_s1 + $0x28] sm:$0xff] }
   0xd   :  { %314 = vmatpush.msra.mxu2 %v225_v19  ;;  %334 = vmatpush.msra.mxu3 %v241_v20  ;;  %v238_v34 = vld [vmem:[%s871_s4 + $0xd0] sm:$0xff]  ;;  %v221_v37 = vld [vmem:[%s871_s4 + $0x48] sm:$0xff]  ;;  %v259_v39 = vld [vmem:[%s871_s4 + $0x178] sm:$0xff] }
   0xe   :  { %120 = vmatpush.msrb.mxu0 %v32_v17  ;;  %140 = vmatpush.msrb.mxu1 %v33_v18  ;;  %v237_v38 = vld [vmem:[%s871_s4 + $0xc8] sm:$0xff]  ;;  %v275_v40 = vld [vmem:[%s871_s4 + $0x1f8] sm:$0xff]  ;;  %v220_v41 = vld [vmem:[%s871_s4 + $0x40] sm:$0xff] }
   0xf   :  { %315 = vmatpush.msra.mxu2 %v224_v25  ;;  %335 = vmatpush.msra.mxu3 %v240_v26  ;;  %v236_v42 = vld [vmem:[%s871_s4 + $0xc0] sm:$0xff]  ;;  %v258_v43 = vld [vmem:[%s871_s4 + $0x170] sm:$0xff]  ;;  %v219_v45 = vld [vmem:[%s871_s4 + $0x38] sm:$0xff] }
  0x10   :  { %121 = vmatpush.msrb.mxu0 %v26_v21  ;;  %141 = vmatpush.msrb.mxu1 %v27_v22  ;;  %v274_v44 = vld [vmem:[%s871_s4 + $0x1f0] sm:$0xff]  ;;  %v235_v46 = vld [vmem:[%s871_s4 + $0xb8] sm:$0xff]  ;;  %v257_v47 = vld [vmem:[%s871_s4 + $0x168] sm:$0xff] }
  0x11   :  { %440 = vmatmul.msk.f32.vlgmr.msrb.gmra.mxu0 %vm62_vm0, %v507_v8  ;;  %441 = vmatmul.msk.f32.vlgmr.msrb.gmra.mxu1 %vm62_vm0, %v507_v8  ;;  %v273_v48 = vld [vmem:[%s871_s4 + $0x1e8] sm:$0xff]  ;;  %v218_v49 = vld [vmem:[%s871_s4 + $0x30] sm:$0xff]  ;;  %v256_v51 = vld [vmem:[%s871_s4 + $0x160] sm:$0xff] }
  0x12   :  { %158 = vmatpush.msra.mxu0 %v46_v23  ;;  %178 = vmatpush.msra.mxu1 %v47_v24  ;;  %v234_v50 = vld [vmem:[%s871_s4 + $0xb0] sm:$0xff]  ;;  %v272_v52 = vld [vmem:[%s871_s4 + $0x1e0] sm:$0xff]  ;;  %v217_v53 = vld [vmem:[%s871_s4 + $0x28] sm:$0xff] }
  0x13   :  { %316 = vmatpush.msra.mxu2 %v223_v29  ;;  %336 = vmatpush.msra.mxu3 %v239_v30  ;;  %v233_v54 = vld [vmem:[%s871_s4 + $0xa8] sm:$0xff]  ;;  %v255_v55 = vld [vmem:[%s871_s4 + $0x158] sm:$0xff]  ;;  %v216_v57 = vld [vmem:[%s871_s4 + $0x20] sm:$0xff] }
  0x14   :  { %159 = vmatpush.msra.mxu0 %v40_v27  ;;  %179 = vmatpush.msra.mxu1 %v41_v28  ;;  %v271_v56 = vld [vmem:[%s871_s4 + $0x1d8] sm:$0xff]  ;;  %v232_v58 = vld [vmem:[%s871_s4 + $0xa0] sm:$0xff]  ;;  %v254_v59 = vld [vmem:[%s871_s4 + $0x150] sm:$0xff] }
  0x15   :  { %317 = vmatpush.msra.mxu2 %v222_v33  ;;  %337 = vmatpush.msra.mxu3 %v238_v34  ;;  %v270_v60 = vld [vmem:[%s871_s4 + $0x1d0] sm:$0xff]  ;;  %v215_v61 = vld [vmem:[%s871_s4 + $0x18] sm:$0xff]  ;;  %v253_v63 = vld [vmem:[%s871_s4 + $0x148] sm:$0xff] }
  0x16   :  { %160 = vmatpush.msra.mxu0 %v34_v31  ;;  %180 = vmatpush.msra.mxu1 %v35_v32  ;;  %v231_v62 = vld [vmem:[%s871_s4 + $0x98] sm:$0xff]  ;;  %v269_v0 = vld [vmem:[%s871_s4 + $0x1c8] sm:$0xff]  ;;  %v214_v1 = vld [vmem:[%s871_s4 + $0x10] sm:$0xff] }
  0x17   :  { %318 = vmatpush.msra.mxu2 %v221_v37  ;;  %338 = vmatpush.msra.mxu3 %v237_v38  ;;  %v230_v2 = vld [vmem:[%s871_s4 + $0x90] sm:$0xff]  ;;  %v252_v3 = vld [vmem:[%s871_s4 + $0x140] sm:$0xff]  ;;  %v213_v4 = vld [vmem:[%s871_s4 + $0x8] sm:$0xff] }
  0x18   :  { %161 = vmatpush.msra.mxu0 %v28_v35  ;;  %181 = vmatpush.msra.mxu1 %v29_v36  ;;  %v229_v5 = vld [vmem:[%s871_s4 + $0x88] sm:$0xff]  ;;  %v212_v6 = vld [vmem:[%s871_s4] sm:$0xff]  ;;  %v307_v9 = vld [vmem:[%s871_s4 + $0x2f8] sm:$0xff] }
  0x19   :  { %442 = vmatmul.msk.f32.vlgmr.msra.gmra.mxu0 %vm62_vm0, %v507_v8  ;;  %443 = vmatmul.msk.f32.vlgmr.msra.gmra.mxu1 %vm62_vm0, %v507_v8  ;;  %v228_v7 = vld [vmem:[%s871_s4 + $0x80] sm:$0xff]  ;;  %v291_v8 = vld [vmem:[%s871_s4 + $0x278] sm:$0xff]  ;;  %v290_v10 = vld [vmem:[%s871_s4 + $0x270] sm:$0xff] }
  0x1a   :  { %352 = vmatpush.msrb.mxu0 %v259_v39  ;;  %372 = vmatpush.msrb.mxu1 %v275_v40  ;;  %v306_v11 = vld [vmem:[%s871_s4 + $0x2f0] sm:$0xff]  ;;  %v289_v12 = vld [vmem:[%s871_s4 + $0x268] sm:$0xff]  ;;  %v288_v14 = vld [vmem:[%s871_s4 + $0x260] sm:$0xff] }
  0x1b   :  { %319 = vmatpush.msra.mxu2 %v220_v41  ;;  %339 = vmatpush.msra.mxu3 %v236_v42  ;;  %v305_v13 = vld [vmem:[%s871_s4 + $0x2e8] sm:$0xff]  ;;  %v251_v15 = vld [vmem:[%s871_s4 + $0x138] sm:$0xff]  ;;  %v268_v16 = vld [vmem:[%s871_s4 + $0x1c0] sm:$0xff] }
  0x1c   :  { %353 = vmatpush.msrb.mxu0 %v258_v43  ;;  %373 = vmatpush.msrb.mxu1 %v274_v44  ;;  %v287_v17 = vld [vmem:[%s871_s4 + $0x258] sm:$0xff]  ;;  %v304_v18 = vld [vmem:[%s871_s4 + $0x2e0] sm:$0xff]  ;;  %v250_v19 = vld [vmem:[%s871_s4 + $0x130] sm:$0xff] }
  0x1d   :  { %320 = vmatpush.msra.mxu2 %v219_v45  ;;  %340 = vmatpush.msra.mxu3 %v235_v46  ;;  %v267_v20 = vld [vmem:[%s871_s4 + $0x1b8] sm:$0xff]  ;;  %v286_v21 = vld [vmem:[%s871_s4 + $0x250] sm:$0xff]  ;;  %v249_v23 = vld [vmem:[%s871_s4 + $0x128] sm:$0xff] }
  0x1e   :  { %354 = vmatpush.msrb.mxu0 %v257_v47  ;;  %374 = vmatpush.msrb.mxu1 %v273_v48  ;;  %v303_v22 = vld [vmem:[%s871_s4 + $0x2d8] sm:$0xff]  ;;  %v266_v24 = vld [vmem:[%s871_s4 + $0x1b0] sm:$0xff]  ;;  %v285_v25 = vld [vmem:[%s871_s4 + $0x248] sm:$0xff] }
  0x1f   :  { %321 = vmatpush.msra.mxu2 %v218_v49  ;;  %341 = vmatpush.msra.mxu3 %v234_v50  ;;  %v302_v26 = vld [vmem:[%s871_s4 + $0x2d0] sm:$0xff]  ;;  %v248_v27 = vld [vmem:[%s871_s4 + $0x120] sm:$0xff]  ;;  %v265_v28 = vld [vmem:[%s871_s4 + $0x1a8] sm:$0xff] }
  0x20   :  { %355 = vmatpush.msrb.mxu0 %v256_v51  ;;  %375 = vmatpush.msrb.mxu1 %v272_v52  ;;  %v284_v29 = vld [vmem:[%s871_s4 + $0x240] sm:$0xff]  ;;  %v301_v30 = vld [vmem:[%s871_s4 + $0x2c8] sm:$0xff]  ;;  %v247_v31 = vld [vmem:[%s871_s4 + $0x118] sm:$0xff] }
  0x21   :  { %322 = vmatpush.msra.mxu2 %v217_v53  ;;  %342 = vmatpush.msra.mxu3 %v233_v54  ;;  %v264_v32 = vld [vmem:[%s871_s4 + $0x1a0] sm:$0xff]  ;;  %v283_v33 = vld [vmem:[%s871_s4 + $0x238] sm:$0xff]  ;;  %v246_v35 = vld [vmem:[%s871_s4 + $0x110] sm:$0xff] }
  0x22   :  { %356 = vmatpush.msrb.mxu0 %v255_v55  ;;  %376 = vmatpush.msrb.mxu1 %v271_v56  ;;  %v300_v34 = vld [vmem:[%s871_s4 + $0x2c0] sm:$0xff]  ;;  %v263_v36 = vld [vmem:[%s871_s4 + $0x198] sm:$0xff]  ;;  %v282_v37 = vld [vmem:[%s871_s4 + $0x230] sm:$0xff] }
  0x23   :  { %323 = vmatpush.msra.mxu2 %v216_v57  ;;  %343 = vmatpush.msra.mxu3 %v232_v58  ;;  %v299_v38 = vld [vmem:[%s871_s4 + $0x2b8] sm:$0xff]  ;;  %v245_v39 = vld [vmem:[%s871_s4 + $0x108] sm:$0xff]  ;;  %v262_v40 = vld [vmem:[%s871_s4 + $0x190] sm:$0xff] }
  0x24   :  { %357 = vmatpush.msrb.mxu0 %v254_v59  ;;  %377 = vmatpush.msrb.mxu1 %v270_v60  ;;  %v281_v41 = vld [vmem:[%s871_s4 + $0x228] sm:$0xff]  ;;  %v298_v42 = vld [vmem:[%s871_s4 + $0x2b0] sm:$0xff]  ;;  %v244_v43 = vld [vmem:[%s871_s4 + $0x100] sm:$0xff] }
  0x25   :  { %324 = vmatpush.msra.mxu2 %v215_v61  ;;  %344 = vmatpush.msra.mxu3 %v231_v62  ;;  %v261_v44 = vld [vmem:[%s871_s4 + $0x188] sm:$0xff]  ;;  %v280_v45 = vld [vmem:[%s871_s4 + $0x220] sm:$0xff]  ;;  %v279_v48 = vld [vmem:[%s871_s4 + $0x218] sm:$0xff] }
  0x26   :  { %358 = vmatpush.msrb.mxu0 %v253_v63  ;;  %378 = vmatpush.msrb.mxu1 %v269_v0  ;;  %v297_v46 = vld [vmem:[%s871_s4 + $0x2a8] sm:$0xff]  ;;  %v260_v47 = vld [vmem:[%s871_s4 + $0x180] sm:$0xff]  ;;  %v278_v50 = vld [vmem:[%s871_s4 + $0x210] sm:$0xff] }
  0x27   :  { %325 = vmatpush.msra.mxu2 %v214_v1  ;;  %345 = vmatpush.msra.mxu3 %v230_v2  ;;  %v296_v49 = vld [vmem:[%s871_s4 + $0x2a0] sm:$0xff]  ;;  %v295_v51 = vld [vmem:[%s871_s4 + $0x298] sm:$0xff]  ;;  %v277_v52 = vld [vmem:[%s871_s4 + $0x208] sm:$0xff] }
  0x28   :  { %359 = vmatpush.msrb.mxu0 %v252_v3  ;;  %379 = vmatpush.msrb.mxu1 %v268_v16  ;;  %v294_v53 = vld [vmem:[%s871_s4 + $0x290] sm:$0xff]  ;;  %v276_v54 = vld [vmem:[%s871_s4 + $0x200] sm:$0xff]  ;;  %v293_v55 = vld [vmem:[%s871_s4 + $0x288] sm:$0xff] }
  0x29   :  { %326 = vmatpush.msra.mxu2 %v213_v4  ;;  %346 = vmatpush.msra.mxu3 %v229_v5  ;;  %v292_v56 = vld [vmem:[%s871_s4 + $0x280] sm:$0xff] }
  0x2a   :  { %360 = vmatpush.msrb.mxu0 %v251_v15  ;;  %380 = vmatpush.msrb.mxu1 %v267_v20  ;;  %v48_v57 = vld [vmem:[%s873_s2] sm:$0x3f] }
  0x2b   :  { %327 = vmatpush.msra.mxu2 %v212_v6  ;;  %347 = vmatpush.msra.mxu3 %v228_v7  ;;  %v50_v58 = vperm.slane %v48_v57, 0  ;;  %v51_v59 = vperm.slane %v48_v57, 1  ;;  %v192_v60 = vld [vmem:[%s874_s3] sm:$0x3f]  ;;  %v52_v6 = vperm.slane %v48_v57, 2  ;;  %v55_v20 = vperm.slane %v48_v57, 5 }
  0x2c   :  { %361 = vmatpush.msrb.mxu0 %v250_v19  ;;  %381 = vmatpush.msrb.mxu1 %v266_v24  ;;  %v194_v1 = vperm.slane %v192_v60, 0  ;;  %v195_v2 = vperm.slane %v192_v60, 1  ;;  %v54_v19 = vperm.slane %v48_v57, 4  ;;  %v198_v24 = vperm.slane %v192_v60, 4 }
  0x2d   :  { %392 = vmatpush.msrb.mxu2 %v291_v8  ;;  %412 = vmatpush.msrb.mxu3 %v307_v9  ;;  %v53_v8 = vperm.slane %v48_v57, 3 }
  0x2e   :  { %362 = vmatpush.msrb.mxu0 %v249_v23  ;;  %382 = vmatpush.msrb.mxu1 %v265_v28 }
  0x2f   :  { %393 = vmatpush.msrb.mxu2 %v290_v10  ;;  %413 = vmatpush.msrb.mxu3 %v306_v11 }
  0x30   :  { %363 = vmatpush.msrb.mxu0 %v248_v27  ;;  %383 = vmatpush.msrb.mxu1 %v264_v32 }
  0x31   :  { %394 = vmatpush.msrb.mxu2 %v289_v12  ;;  %414 = vmatpush.msrb.mxu3 %v305_v13  ;;  %v196_v12 = vperm.slane %v192_v60, 2 }
  0x32   :  { %364 = vmatpush.msrb.mxu0 %v247_v31  ;;  %384 = vmatpush.msrb.mxu1 %v263_v36  ;;  %v444_v31 = vld [vmem:[%s872_s5] ss:$0 sm:$0xff] }
  0x33   :  { %395 = vmatpush.msrb.mxu2 %v288_v14  ;;  %415 = vmatpush.msrb.mxu3 %v304_v18  ;;  %v197_v14 = vperm.slane %v192_v60, 3 }
  0x34   :  { %365 = vmatpush.msrb.mxu0 %v246_v35  ;;  %385 = vmatpush.msrb.mxu1 %v262_v40 }
  0x35   :  { %396 = vmatpush.msrb.mxu2 %v287_v17  ;;  %416 = vmatpush.msrb.mxu3 %v303_v22 }
  0x36   :  { %366 = vmatpush.msrb.mxu0 %v245_v39  ;;  %386 = vmatpush.msrb.mxu1 %v261_v44 }
  0x37   :  { %397 = vmatpush.msrb.mxu2 %v286_v21  ;;  %417 = vmatpush.msrb.mxu3 %v302_v26  ;;  %v199_v26 = vperm.slane %v192_v60, 5 }
  0x38   :  { %367 = vmatpush.msrb.mxu0 %v244_v43  ;;  %387 = vmatpush.msrb.mxu1 %v260_v47 }
  0x39   :  { %398 = vmatpush.msrb.mxu2 %v285_v25  ;;  %418 = vmatpush.msrb.mxu3 %v301_v30 }
  0x3b   :  { %399 = vmatpush.msrb.mxu2 %v284_v29  ;;  %419 = vmatpush.msrb.mxu3 %v300_v34 }
  0x3d   :  { %400 = vmatpush.msrb.mxu2 %v283_v33  ;;  %420 = vmatpush.msrb.mxu3 %v299_v38 }
  0x3f   :  { %401 = vmatpush.msrb.mxu2 %v282_v37  ;;  %421 = vmatpush.msrb.mxu3 %v298_v42 }
  0x41   :  { %402 = vmatpush.msrb.mxu2 %v281_v41  ;;  %422 = vmatpush.msrb.mxu3 %v297_v46 }
  0x43   :  { %403 = vmatpush.msrb.mxu2 %v280_v45  ;;  %423 = vmatpush.msrb.mxu3 %v296_v49 }
  0x45   :  { %404 = vmatpush.msrb.mxu2 %v279_v48  ;;  %424 = vmatpush.msrb.mxu3 %v295_v51 }
  0x47   :  { %405 = vmatpush.msrb.mxu2 %v278_v50  ;;  %425 = vmatpush.msrb.mxu3 %v294_v53 }
  0x49   :  { %406 = vmatpush.msrb.mxu2 %v277_v52  ;;  %426 = vmatpush.msrb.mxu3 %v293_v55 }
  0x4b   :  { %407 = vmatpush.msrb.mxu2 %v276_v54  ;;  %427 = vmatpush.msrb.mxu3 %v292_v56 }
  0x86   :  { %v83_v61 = vpop.f32.mrf.mxu0  ;;  %v103_v62 = vpop.f32.mrf.mxu1 }
  0x87   :  { %v84_v63 = vadd.f32 %v83_v61, %v50_v58  ;;  %v104_v0 = vadd.f32 %v103_v62, %v51_v59 }
  0x89   :  { %v186_v3 = vmax.f32 %v84_v63, 0.0  ;;  %v187_v4 = vmax.f32 %v104_v0, 0.0 }
  0x8b   :  { %v206_v5 = vmul.f32 %v194_v1, %v186_v3  ;;  %v207_v7 = vmul.f32 %v195_v2, %v187_v4 }
  0x8d   :  { %328 = vmatmul.f32.vlgmr.msra.gmra.mxu2 %v206_v5  ;;  %348 = vmatmul.f32.vlgmr.msra.gmra.mxu3 %v207_v7 }
  0x8e   :  { %v123_v9 = vpop.f32.mrf.mxu0  ;;  %v143_v10 = vpop.f32.mrf.mxu1 }
  0x8f   :  { %v124_v11 = vadd.f32 %v123_v9, %v52_v6  ;;  %v144_v13 = vadd.f32 %v143_v10, %v53_v8 }
  0x91   :  { %v188_v15 = vmax.f32 %v124_v11, 0.0  ;;  %v189_v16 = vmax.f32 %v144_v13, 0.0 }
  0x93   :  { %v208_v17 = vmul.f32 %v196_v12, %v188_v15  ;;  %v209_v18 = vmul.f32 %v197_v14, %v189_v16 }
  0x95   :  { %368 = vmatmul.f32.vlgmr.msrb.gmra.mxu0 %v208_v17  ;;  %388 = vmatmul.f32.vlgmr.msrb.gmra.mxu1 %v209_v18 }
  0x96   :  { %v163_v21 = vpop.f32.mrf.mxu0  ;;  %v183_v22 = vpop.f32.mrf.mxu1 }
  0x97   :  { %v164_v23 = vadd.f32 %v163_v21, %v54_v19  ;;  %v184_v25 = vadd.f32 %v183_v22, %v55_v20 }
  0x99   :  { %v190_v27 = vmax.f32 %v164_v23, 0.0  ;;  %v191_v28 = vmax.f32 %v184_v25, 0.0 }
  0x9b   :  { %v210_v29 = vmul.f32 %v198_v24, %v190_v27  ;;  %v211_v30 = vmul.f32 %v199_v26, %v191_v28 }
  0x9d   :  { %408 = vmatmul.f32.vlgmr.msrb.gmra.mxu2 %v210_v29  ;;  %428 = vmatmul.f32.vlgmr.msrb.gmra.mxu3 %v211_v30 }
 0x110   :  { %v329_v32 = vpop.f32.mrf.mxu2  ;;  %v349_v34 = vpop.f32.mrf.mxu3 }
 0x111   :  { %v330_v33 = vadd.f32 %v444_v31, %v329_v32 }
 0x112   :  { %v369_v36 = vpop.f32.mrf.mxu0  ;;  %v389_v38 = vpop.f32.mrf.mxu1 }
 0x113   :  { %v350_v35 = vadd.f32 %v349_v34, %v330_v33 }
 0x115   :  { %v370_v37 = vadd.f32 %v369_v36, %v350_v35 }
 0x117   :  { %v390_v39 = vadd.f32 %v389_v38, %v370_v37 }
 0x120   :  { %v409_v40 = vpop.f32.mrf.mxu2  ;;  %v429_v41 = vpop.f32.mrf.mxu3 }
 0x121   :  { %v410_v42 = vadd.f32 %v409_v40, %v390_v39 }
 0x123   :  { %v430_v43 = vadd.f32 %v429_v41, %v410_v42 }
 0x125   :  { %433 = vst.msk [vmem:[%s875_s6] sm:$0xff] %vm432_vm1, %v430_v43 }

</bundles_post_ra>
